<compile_context>
chip_gen: v7x
topology: tpu7x:2x2x1
jax: 0.10.0
libtpu: 0.0.40
codegen_flags: <defaults>
</compile_context>

<pallas_src>
import functools
import numpy as np
import jax
import jax.numpy as jnp
from jax.experimental import pallas as pl
from jax.experimental.pallas import tpu as pltpu

SELU_ALPHA = 1.6732632423543772
SELU_SCALE = 1.0507009873554805
BN_EPS = 1e-5
MXU_DTYPE = jnp.float32  # set to jnp.bfloat16 on v6e/v7x for higher MXU TF/s
                         # (kept f32 so the 1e-4 reference tolerance holds)


def _selu(h):
    # exp() goes to the EUP slot; the rest is VPU elementwise.
    return SELU_SCALE * jnp.where(h > 0, h, SELU_ALPHA * (jnp.exp(h) - 1.0))


def resblock_kernel(x_ref, mask_ref, w1_ref, b1_ref, g1_ref, be1_ref,
                    w2_ref, b2_ref, g2_ref, be2_ref, o_ref, *, W):
    C, P = x_ref.shape          # C channels on sublanes, P = N*H*W on lanes
    x = x_ref[...]              # f32, fully lane-dense

    def conv3x3(a, w_ref, b_ref):
        # im2col via 8 lane-axis rolls (XLU) + precomputed border masks; tap
        # blocks stack along sublanes at aligned 32-row offsets, giving one
        # (C, 9C) @ (9C, P) MXU matmul per conv (K = 9*C = 288).
        blocks = []
        t = 0
        for dy in (-1, 0, 1):
            for dx in (-1, 0, 1):
                off = dy * W + dx
                if off == 0:
                    blocks.append(a)                       # center tap: no mask
                else:
                    shifted = pltpu.roll(a, shift=(-off) % P, axis=1)
                    blocks.append(shifted * mask_ref[t])   # (C,P) * (1,P) bcast
                t += 1
        m = jnp.concatenate(blocks, axis=0)                # (9C, P)
        y = jnp.dot(w_ref[...].astype(MXU_DTYPE), m.astype(MXU_DTYPE),
                    preferred_element_type=jnp.float32)    # (C, P), f32 accum
        # NOTE: the conv bias is mathematically cancelled by the following
        # training-mode BN (mean subtraction), but we keep it for literal
        # semantic fidelity — it is a single (C,P)+(C,1) broadcast add.
        return y + b_ref[...]

    def batchnorm(h, g_ref, be_ref):
        # PyTorch training-mode BatchNorm2d: per-channel stats over N,H,W
        # (= the entire lane axis), biased variance. Folded to one FMA:
        #   out = (h - mu) * (rsqrt(var+eps) * gamma) + beta
        mu = jnp.mean(h, axis=1, keepdims=True)            # (C,1)  XLU reduce
        centered = h - mu                                  # (C,P)
        var = jnp.mean(centered * centered, axis=1, keepdims=True)
        scale = jax.lax.rsqrt(var + BN_EPS) * g_ref[...]   # (C,1)  tiny
        return centered * scale + be_ref[...]              # one mul + one add

    h = _selu(batchnorm(conv3x3(x, w1_ref, b1_ref), g1_ref, be1_ref))
    h = batchnorm(conv3x3(h, w2_ref, b2_ref), g2_ref, be2_ref) + x   # residual
    o_ref[...] = _selu(h)


def _tap_masks(N, H, W):
    """{0,1} masks (one per 3x3 tap) marking lanes whose shifted source pixel
    lies inside the image (conv padding=1 zero-fill semantics)."""
    p = np.arange(N * H * W)
    hh = (p // W) % H
    ww = p % W
    rows = []
    for dy in (-1, 0, 1):
        for dx in (-1, 0, 1):
            ok = (hh + dy >= 0) & (hh + dy < H) & (ww + dx >= 0) & (ww + dx < W)
            rows.append(ok.astype(np.float32))
    return np.stack(rows).reshape(9, 1, N * H * W)


def copied_submodule_forward(x_nchw, params):
    N, C, H, W = x_nchw.shape
    P = N * H * W
    # NCHW -> (C, N*H*W): channels on sublanes, batch*spatial on the lane axis
    # (P = 128 here -> unmasked, fully dense vector loads/stores).
    x_c = jnp.transpose(x_nchw, (1, 0, 2, 3)).reshape(C, P).astype(jnp.float32)
    masks = jnp.asarray(_tap_masks(N, H, W))

    def pack_w(w_hwio):
        # HWIO (3,3,Cin,Cout) -> (Cout, 9*Cin); K index = (ky*3+kx)*Cin + cin,
        # matching the tap order of the im2col sublane concat.
        return jnp.transpose(w_hwio, (3, 0, 1, 2)).reshape(C, 9 * C)

    def col(v):
        return v.reshape(C, 1).astype(jnp.float32)

    out_c = pl.pallas_call(
        functools.partial(resblock_kernel, W=W),
        out_shape=jax.ShapeDtypeStruct((C, P), jnp.float32),
        in_specs=[pl.BlockSpec(memory_space=pltpu.MemorySpace.VMEM)] * 10,
        out_specs=pl.BlockSpec(memory_space=pltpu.MemorySpace.VMEM),
        compiler_params=pltpu.CompilerParams(vmem_limit_bytes=32 * 1024 * 1024),
    )(x_c, masks,
      pack_w(params['w1']), col(params['b1']), col(params['g1']), col(params['be1']),
      pack_w(params['w2']), col(params['b2']), col(params['g2']), col(params['be2']))
    # TODO(synk): for large N*H*W (or v7x's 64 MiB VMEM) add a grid over batch
    # stripes with two-pass / precomputed BN statistics; training-mode BN
    # couples all positions, so the monolithic call is intentional at this size.
    return jnp.transpose(out_c.reshape(C, N, H, W), (1, 0, 2, 3))


def init_params(key, hidden):
    """Deterministic init matching the PyTorch module's shapes.
    Conv weights: xavier_uniform over (Cout, Cin, 3, 3) -> stored HWIO (3,3,Cin,Cout).
    Conv biases: default Conv2d uniform(+-1/sqrt(fan_in)).
    BatchNorm: gamma=1, beta=0 (defaults)."""
    k1, k2, k3, k4 = jax.random.split(key, 4)
    fan = hidden * 9
    xavier_bound = float(np.sqrt(6.0 / (fan + fan)))
    bias_bound = float(1.0 / np.sqrt(fan))
    w1 = jax.random.uniform(k1, (3, 3, hidden, hidden), jnp.float32,
                            -xavier_bound, xavier_bound)
    w2 = jax.random.uniform(k2, (3, 3, hidden, hidden), jnp.float32,
                            -xavier_bound, xavier_bound)
    b1 = jax.random.uniform(k3, (hidden,), jnp.float32, -bias_bound, bias_bound)
    b2 = jax.random.uniform(k4, (hidden,), jnp.float32, -bias_bound, bias_bound)
    ones = jnp.ones((hidden,), jnp.float32)
    zeros = jnp.zeros((hidden,), jnp.float32)
    return dict(w1=w1, b1=b1, g1=ones, be1=zeros,
                w2=w2, b2=b2, g2=ones, be2=zeros)


def reference_forward(x_nchw, p):
    """Pure-JAX reference (XLA conv) for correctness checking."""
    x = jnp.transpose(x_nchw, (0, 2, 3, 1)).astype(jnp.float32)
    C = x.shape[-1]

    def conv(h, w, b):
        y = jax.lax.conv_general_dilated(
            h, w, window_strides=(1, 1), padding='SAME',
            dimension_numbers=('NHWC', 'HWIO', 'NHWC'))
        return y + b.reshape(1, 1, 1, C)

    def bn(h, g, be):
        m = jnp.mean(h, axis=(0, 1, 2), keepdims=True)
        v = jnp.mean((h - m) ** 2, axis=(0, 1, 2), keepdims=True)
        return (h - m) / jnp.sqrt(v + BN_EPS) * g.reshape(1, 1, 1, C) \
            + be.reshape(1, 1, 1, C)

    h = _selu(bn(conv(x, p['w1'], p['b1']), p['g1'], p['be1']))
    h = bn(conv(h, p['w2'], p['b2']), p['g2'], p['be2']) + x
    return jnp.transpose(_selu(h), (0, 3, 1, 2))


if __name__ == "__main__":
    hidden_size = 32
    N, H, W = 2, 8, 8      # N*H*W = 128 -> exactly one full lane tile

    key = jax.random.PRNGKey(0)
    kx, kp = jax.random.split(key)
    x = jax.random.normal(kx, (N, hidden_size, H, W), jnp.float32)  # NCHW
    params = init_params(kp, hidden_size)

    out = jax.block_until_ready(copied_submodule_forward(x, params))
    ref = jax.block_until_ready(reference_forward(x, params))

    assert out.shape == (N, hidden_size, H, W)
    assert np.allclose(np.asarray(out), np.asarray(ref), rtol=1e-4, atol=1e-4), \
        "Pallas kernel does not match JAX reference"
    print("KERNEL_OK")
</pallas_src>

<mosaic_0001>
module attributes {stable_mosaic.version = 11 : i64} {
  func.func @resblock_kernel(%arg0: memref<32x128xf32, #tpu.memory_space<vmem>>, %arg1: memref<9x1x128xf32, #tpu.memory_space<vmem>>, %arg2: memref<32x288xf32, #tpu.memory_space<vmem>>, %arg3: memref<32x1xf32, #tpu.memory_space<vmem>>, %arg4: memref<32x1xf32, #tpu.memory_space<vmem>>, %arg5: memref<32x1xf32, #tpu.memory_space<vmem>>, %arg6: memref<32x288xf32, #tpu.memory_space<vmem>>, %arg7: memref<32x1xf32, #tpu.memory_space<vmem>>, %arg8: memref<32x1xf32, #tpu.memory_space<vmem>>, %arg9: memref<32x1xf32, #tpu.memory_space<vmem>>, %arg10: memref<32x128xf32, #tpu.memory_space<vmem>>) attributes {dimension_semantics = [], scalar_prefetch = 0 : i64, scratch_operands = 0 : i64, tpu.core_type = #tpu.core_type<tc>} {
    %c0 = arith.constant 0 : index
    %c0_0 = arith.constant 0 : index
    %0 = vector.load %arg0[%c0, %c0_0] : memref<32x128xf32, #tpu.memory_space<vmem>>, vector<32x128xf32>
    %c9_i32 = arith.constant 9 : i32
    %1 = tpu.dynamic_rotate %0 by %c9_i32 dim 1 : vector<32x128xf32>, i32 -> vector<32x128xf32>
    %c0_1 = arith.constant 0 : index
    %c0_2 = arith.constant 0 : index
    %c0_3 = arith.constant 0 : index
    %2 = vector.load %arg1[%c0_1, %c0_2, %c0_3] : memref<9x1x128xf32, #tpu.memory_space<vmem>>, vector<1x1x128xf32>
    %3 = vector.shape_cast %2 : vector<1x1x128xf32> to vector<1x128xf32>
    %4 = vector.broadcast %3 : vector<1x128xf32> to vector<32x128xf32>
    %5 = arith.mulf %1, %4 : vector<32x128xf32>
    %c8_i32 = arith.constant 8 : i32
    %6 = tpu.dynamic_rotate %0 by %c8_i32 dim 1 : vector<32x128xf32>, i32 -> vector<32x128xf32>
    %c1 = arith.constant 1 : index
    %c0_4 = arith.constant 0 : index
    %c0_5 = arith.constant 0 : index
    %7 = vector.load %arg1[%c1, %c0_4, %c0_5] : memref<9x1x128xf32, #tpu.memory_space<vmem>>, vector<1x1x128xf32>
    %8 = vector.shape_cast %7 : vector<1x1x128xf32> to vector<1x128xf32>
    %9 = vector.broadcast %8 : vector<1x128xf32> to vector<32x128xf32>
    %10 = arith.mulf %6, %9 : vector<32x128xf32>
    %c7_i32 = arith.constant 7 : i32
    %11 = tpu.dynamic_rotate %0 by %c7_i32 dim 1 : vector<32x128xf32>, i32 -> vector<32x128xf32>
    %c2 = arith.constant 2 : index
    %c0_6 = arith.constant 0 : index
    %c0_7 = arith.constant 0 : index
    %12 = vector.load %arg1[%c2, %c0_6, %c0_7] : memref<9x1x128xf32, #tpu.memory_space<vmem>>, vector<1x1x128xf32>
    %13 = vector.shape_cast %12 : vector<1x1x128xf32> to vector<1x128xf32>
    %14 = vector.broadcast %13 : vector<1x128xf32> to vector<32x128xf32>
    %15 = arith.mulf %11, %14 : vector<32x128xf32>
    %c1_i32 = arith.constant 1 : i32
    %16 = tpu.dynamic_rotate %0 by %c1_i32 dim 1 : vector<32x128xf32>, i32 -> vector<32x128xf32>
    %c3 = arith.constant 3 : index
    %c0_8 = arith.constant 0 : index
    %c0_9 = arith.constant 0 : index
    %17 = vector.load %arg1[%c3, %c0_8, %c0_9] : memref<9x1x128xf32, #tpu.memory_space<vmem>>, vector<1x1x128xf32>
    %18 = vector.shape_cast %17 : vector<1x1x128xf32> to vector<1x128xf32>
    %19 = vector.broadcast %18 : vector<1x128xf32> to vector<32x128xf32>
    %20 = arith.mulf %16, %19 : vector<32x128xf32>
    %c127_i32 = arith.constant 127 : i32
    %21 = tpu.dynamic_rotate %0 by %c127_i32 dim 1 : vector<32x128xf32>, i32 -> vector<32x128xf32>
    %c5 = arith.constant 5 : index
    %c0_10 = arith.constant 0 : index
    %c0_11 = arith.constant 0 : index
    %22 = vector.load %arg1[%c5, %c0_10, %c0_11] : memref<9x1x128xf32, #tpu.memory_space<vmem>>, vector<1x1x128xf32>
    %23 = vector.shape_cast %22 : vector<1x1x128xf32> to vector<1x128xf32>
    %24 = vector.broadcast %23 : vector<1x128xf32> to vector<32x128xf32>
    %25 = arith.mulf %21, %24 : vector<32x128xf32>
    %c121_i32 = arith.constant 121 : i32
    %26 = tpu.dynamic_rotate %0 by %c121_i32 dim 1 : vector<32x128xf32>, i32 -> vector<32x128xf32>
    %c6 = arith.constant 6 : index
    %c0_12 = arith.constant 0 : index
    %c0_13 = arith.constant 0 : index
    %27 = vector.load %arg1[%c6, %c0_12, %c0_13] : memref<9x1x128xf32, #tpu.memory_space<vmem>>, vector<1x1x128xf32>
    %28 = vector.shape_cast %27 : vector<1x1x128xf32> to vector<1x128xf32>
    %29 = vector.broadcast %28 : vector<1x128xf32> to vector<32x128xf32>
    %30 = arith.mulf %26, %29 : vector<32x128xf32>
    %c120_i32 = arith.constant 120 : i32
    %31 = tpu.dynamic_rotate %0 by %c120_i32 dim 1 : vector<32x128xf32>, i32 -> vector<32x128xf32>
    %c7 = arith.constant 7 : index
    %c0_14 = arith.constant 0 : index
    %c0_15 = arith.constant 0 : index
    %32 = vector.load %arg1[%c7, %c0_14, %c0_15] : memref<9x1x128xf32, #tpu.memory_space<vmem>>, vector<1x1x128xf32>
    %33 = vector.shape_cast %32 : vector<1x1x128xf32> to vector<1x128xf32>
    %34 = vector.broadcast %33 : vector<1x128xf32> to vector<32x128xf32>
    %35 = arith.mulf %31, %34 : vector<32x128xf32>
    %c119_i32 = arith.constant 119 : i32
    %36 = tpu.dynamic_rotate %0 by %c119_i32 dim 1 : vector<32x128xf32>, i32 -> vector<32x128xf32>
    %c8 = arith.constant 8 : index
    %c0_16 = arith.constant 0 : index
    %c0_17 = arith.constant 0 : index
    %37 = vector.load %arg1[%c8, %c0_16, %c0_17] : memref<9x1x128xf32, #tpu.memory_space<vmem>>, vector<1x1x128xf32>
    %38 = vector.shape_cast %37 : vector<1x1x128xf32> to vector<1x128xf32>
    %39 = vector.broadcast %38 : vector<1x128xf32> to vector<32x128xf32>
    %40 = arith.mulf %36, %39 : vector<32x128xf32>
    %41 = tpu.concatenate %5, %10, %15, %20, %0, %25, %30, %35, %40 in 0 : vector<32x128xf32>, vector<32x128xf32>, vector<32x128xf32>, vector<32x128xf32>, vector<32x128xf32>, vector<32x128xf32>, vector<32x128xf32>, vector<32x128xf32>, vector<32x128xf32> -> vector<288x128xf32>
    %c0_18 = arith.constant 0 : index
    %c0_19 = arith.constant 0 : index
    %42 = vector.load %arg2[%c0_18, %c0_19] : memref<32x288xf32, #tpu.memory_space<vmem>>, vector<32x288xf32>
    %cst = arith.constant dense<0.000000e+00> : vector<32x128xf32>
    %43 = tpu.matmul %42, %41, %cst {dimension_numbers = #tpu.dot_dimension_numbers<[1], [0], [0], [1], [0, 0, 1, 1], [], []>} : vector<32x288xf32>, vector<288x128xf32>, vector<32x128xf32> -> vector<32x128xf32>
    %c0_20 = arith.constant 0 : index
    %c0_21 = arith.constant 0 : index
    %44 = vector.load %arg3[%c0_20, %c0_21] : memref<32x1xf32, #tpu.memory_space<vmem>>, vector<32x1xf32>
    %45 = vector.broadcast %44 : vector<32x1xf32> to vector<32x128xf32>
    %46 = arith.addf %43, %45 : vector<32x128xf32>
    %cst_22 = arith.constant dense<0.000000e+00> : vector<32xf32>
    %47 = vector.multi_reduction <add>, %46, %cst_22 [1] : vector<32x128xf32> to vector<32xf32>
    %48 = vector.shape_cast %47 : vector<32xf32> to vector<32x1xf32>
    %cst_23 = arith.constant 1.280000e+02 : f32
    %49 = vector.broadcast %cst_23 : f32 to vector<32x1xf32>
    %50 = arith.divf %48, %49 : vector<32x1xf32>
    %51 = vector.broadcast %50 : vector<32x1xf32> to vector<32x128xf32>
    %52 = arith.subf %46, %51 : vector<32x128xf32>
    %53 = arith.mulf %52, %52 : vector<32x128xf32>
    %cst_24 = arith.constant dense<0.000000e+00> : vector<32xf32>
    %54 = vector.multi_reduction <add>, %53, %cst_24 [1] : vector<32x128xf32> to vector<32xf32>
    %55 = vector.shape_cast %54 : vector<32xf32> to vector<32x1xf32>
    %cst_25 = arith.constant 1.280000e+02 : f32
    %56 = vector.broadcast %cst_25 : f32 to vector<32x1xf32>
    %57 = arith.divf %55, %56 : vector<32x1xf32>
    %cst_26 = arith.constant 9.99999974E-6 : f32
    %58 = vector.broadcast %cst_26 : f32 to vector<32x1xf32>
    %59 = arith.addf %57, %58 : vector<32x1xf32>
    %60 = math.rsqrt %59 : vector<32x1xf32>
    %c0_27 = arith.constant 0 : index
    %c0_28 = arith.constant 0 : index
    %61 = vector.load %arg4[%c0_27, %c0_28] : memref<32x1xf32, #tpu.memory_space<vmem>>, vector<32x1xf32>
    %62 = arith.mulf %60, %61 : vector<32x1xf32>
    %63 = vector.broadcast %62 : vector<32x1xf32> to vector<32x128xf32>
    %64 = arith.mulf %52, %63 : vector<32x128xf32>
    %c0_29 = arith.constant 0 : index
    %c0_30 = arith.constant 0 : index
    %65 = vector.load %arg5[%c0_29, %c0_30] : memref<32x1xf32, #tpu.memory_space<vmem>>, vector<32x1xf32>
    %66 = vector.broadcast %65 : vector<32x1xf32> to vector<32x128xf32>
    %67 = arith.addf %64, %66 : vector<32x128xf32>
    %cst_31 = arith.constant 0.000000e+00 : f32
    %68 = vector.broadcast %cst_31 : f32 to vector<32x128xf32>
    %69 = arith.cmpf ogt, %67, %68 : vector<32x128xf32>
    %70 = math.exp %67 : vector<32x128xf32>
    %cst_32 = arith.constant 1.000000e+00 : f32
    %71 = vector.broadcast %cst_32 : f32 to vector<32x128xf32>
    %72 = arith.subf %70, %71 : vector<32x128xf32>
    %cst_33 = arith.constant 1.67326319 : f32
    %73 = vector.broadcast %cst_33 : f32 to vector<32x128xf32>
    %74 = arith.mulf %73, %72 : vector<32x128xf32>
    %75 = arith.select %69, %67, %74 : vector<32x128xi1>, vector<32x128xf32>
    %cst_34 = arith.constant 1.05070102 : f32
    %76 = vector.broadcast %cst_34 : f32 to vector<32x128xf32>
    %77 = arith.mulf %76, %75 : vector<32x128xf32>
    %c9_i32_35 = arith.constant 9 : i32
    %78 = tpu.dynamic_rotate %77 by %c9_i32_35 dim 1 : vector<32x128xf32>, i32 -> vector<32x128xf32>
    %c0_36 = arith.constant 0 : index
    %c0_37 = arith.constant 0 : index
    %c0_38 = arith.constant 0 : index
    %79 = vector.load %arg1[%c0_36, %c0_37, %c0_38] : memref<9x1x128xf32, #tpu.memory_space<vmem>>, vector<1x1x128xf32>
    %80 = vector.shape_cast %79 : vector<1x1x128xf32> to vector<1x128xf32>
    %81 = vector.broadcast %80 : vector<1x128xf32> to vector<32x128xf32>
    %82 = arith.mulf %78, %81 : vector<32x128xf32>
    %c8_i32_39 = arith.constant 8 : i32
    %83 = tpu.dynamic_rotate %77 by %c8_i32_39 dim 1 : vector<32x128xf32>, i32 -> vector<32x128xf32>
    %c1_40 = arith.constant 1 : index
    %c0_41 = arith.constant 0 : index
    %c0_42 = arith.constant 0 : index
    %84 = vector.load %arg1[%c1_40, %c0_41, %c0_42] : memref<9x1x128xf32, #tpu.memory_space<vmem>>, vector<1x1x128xf32>
    %85 = vector.shape_cast %84 : vector<1x1x128xf32> to vector<1x128xf32>
    %86 = vector.broadcast %85 : vector<1x128xf32> to vector<32x128xf32>
    %87 = arith.mulf %83, %86 : vector<32x128xf32>
    %c7_i32_43 = arith.constant 7 : i32
    %88 = tpu.dynamic_rotate %77 by %c7_i32_43 dim 1 : vector<32x128xf32>, i32 -> vector<32x128xf32>
    %c2_44 = arith.constant 2 : index
    %c0_45 = arith.constant 0 : index
    %c0_46 = arith.constant 0 : index
    %89 = vector.load %arg1[%c2_44, %c0_45, %c0_46] : memref<9x1x128xf32, #tpu.memory_space<vmem>>, vector<1x1x128xf32>
    %90 = vector.shape_cast %89 : vector<1x1x128xf32> to vector<1x128xf32>
    %91 = vector.broadcast %90 : vector<1x128xf32> to vector<32x128xf32>
    %92 = arith.mulf %88, %91 : vector<32x128xf32>
    %c1_i32_47 = arith.constant 1 : i32
    %93 = tpu.dynamic_rotate %77 by %c1_i32_47 dim 1 : vector<32x128xf32>, i32 -> vector<32x128xf32>
    %c3_48 = arith.constant 3 : index
    %c0_49 = arith.constant 0 : index
    %c0_50 = arith.constant 0 : index
    %94 = vector.load %arg1[%c3_48, %c0_49, %c0_50] : memref<9x1x128xf32, #tpu.memory_space<vmem>>, vector<1x1x128xf32>
    %95 = vector.shape_cast %94 : vector<1x1x128xf32> to vector<1x128xf32>
    %96 = vector.broadcast %95 : vector<1x128xf32> to vector<32x128xf32>
    %97 = arith.mulf %93, %96 : vector<32x128xf32>
    %c127_i32_51 = arith.constant 127 : i32
    %98 = tpu.dynamic_rotate %77 by %c127_i32_51 dim 1 : vector<32x128xf32>, i32 -> vector<32x128xf32>
    %c5_52 = arith.constant 5 : index
    %c0_53 = arith.constant 0 : index
    %c0_54 = arith.constant 0 : index
    %99 = vector.load %arg1[%c5_52, %c0_53, %c0_54] : memref<9x1x128xf32, #tpu.memory_space<vmem>>, vector<1x1x128xf32>
    %100 = vector.shape_cast %99 : vector<1x1x128xf32> to vector<1x128xf32>
    %101 = vector.broadcast %100 : vector<1x128xf32> to vector<32x128xf32>
    %102 = arith.mulf %98, %101 : vector<32x128xf32>
    %c121_i32_55 = arith.constant 121 : i32
    %103 = tpu.dynamic_rotate %77 by %c121_i32_55 dim 1 : vector<32x128xf32>, i32 -> vector<32x128xf32>
    %c6_56 = arith.constant 6 : index
    %c0_57 = arith.constant 0 : index
    %c0_58 = arith.constant 0 : index
    %104 = vector.load %arg1[%c6_56, %c0_57, %c0_58] : memref<9x1x128xf32, #tpu.memory_space<vmem>>, vector<1x1x128xf32>
    %105 = vector.shape_cast %104 : vector<1x1x128xf32> to vector<1x128xf32>
    %106 = vector.broadcast %105 : vector<1x128xf32> to vector<32x128xf32>
    %107 = arith.mulf %103, %106 : vector<32x128xf32>
    %c120_i32_59 = arith.constant 120 : i32
    %108 = tpu.dynamic_rotate %77 by %c120_i32_59 dim 1 : vector<32x128xf32>, i32 -> vector<32x128xf32>
    %c7_60 = arith.constant 7 : index
    %c0_61 = arith.constant 0 : index
    %c0_62 = arith.constant 0 : index
    %109 = vector.load %arg1[%c7_60, %c0_61, %c0_62] : memref<9x1x128xf32, #tpu.memory_space<vmem>>, vector<1x1x128xf32>
    %110 = vector.shape_cast %109 : vector<1x1x128xf32> to vector<1x128xf32>
    %111 = vector.broadcast %110 : vector<1x128xf32> to vector<32x128xf32>
    %112 = arith.mulf %108, %111 : vector<32x128xf32>
    %c119_i32_63 = arith.constant 119 : i32
    %113 = tpu.dynamic_rotate %77 by %c119_i32_63 dim 1 : vector<32x128xf32>, i32 -> vector<32x128xf32>
    %c8_64 = arith.constant 8 : index
    %c0_65 = arith.constant 0 : index
    %c0_66 = arith.constant 0 : index
    %114 = vector.load %arg1[%c8_64, %c0_65, %c0_66] : memref<9x1x128xf32, #tpu.memory_space<vmem>>, vector<1x1x128xf32>
    %115 = vector.shape_cast %114 : vector<1x1x128xf32> to vector<1x128xf32>
    %116 = vector.broadcast %115 : vector<1x128xf32> to vector<32x128xf32>
    %117 = arith.mulf %113, %116 : vector<32x128xf32>
    %118 = tpu.concatenate %82, %87, %92, %97, %77, %102, %107, %112, %117 in 0 : vector<32x128xf32>, vector<32x128xf32>, vector<32x128xf32>, vector<32x128xf32>, vector<32x128xf32>, vector<32x128xf32>, vector<32x128xf32>, vector<32x128xf32>, vector<32x128xf32> -> vector<288x128xf32>
    %c0_67 = arith.constant 0 : index
    %c0_68 = arith.constant 0 : index
    %119 = vector.load %arg6[%c0_67, %c0_68] : memref<32x288xf32, #tpu.memory_space<vmem>>, vector<32x288xf32>
    %cst_69 = arith.constant dense<0.000000e+00> : vector<32x128xf32>
    %120 = tpu.matmul %119, %118, %cst_69 {dimension_numbers = #tpu.dot_dimension_numbers<[1], [0], [0], [1], [0, 0, 1, 1], [], []>} : vector<32x288xf32>, vector<288x128xf32>, vector<32x128xf32> -> vector<32x128xf32>
    %c0_70 = arith.constant 0 : index
    %c0_71 = arith.constant 0 : index
    %121 = vector.load %arg7[%c0_70, %c0_71] : memref<32x1xf32, #tpu.memory_space<vmem>>, vector<32x1xf32>
    %122 = vector.broadcast %121 : vector<32x1xf32> to vector<32x128xf32>
    %123 = arith.addf %120, %122 : vector<32x128xf32>
    %cst_72 = arith.constant dense<0.000000e+00> : vector<32xf32>
    %124 = vector.multi_reduction <add>, %123, %cst_72 [1] : vector<32x128xf32> to vector<32xf32>
    %125 = vector.shape_cast %124 : vector<32xf32> to vector<32x1xf32>
    %cst_73 = arith.constant 1.280000e+02 : f32
    %126 = vector.broadcast %cst_73 : f32 to vector<32x1xf32>
    %127 = arith.divf %125, %126 : vector<32x1xf32>
    %128 = vector.broadcast %127 : vector<32x1xf32> to vector<32x128xf32>
    %129 = arith.subf %123, %128 : vector<32x128xf32>
    %130 = arith.mulf %129, %129 : vector<32x128xf32>
    %cst_74 = arith.constant dense<0.000000e+00> : vector<32xf32>
    %131 = vector.multi_reduction <add>, %130, %cst_74 [1] : vector<32x128xf32> to vector<32xf32>
    %132 = vector.shape_cast %131 : vector<32xf32> to vector<32x1xf32>
    %cst_75 = arith.constant 1.280000e+02 : f32
    %133 = vector.broadcast %cst_75 : f32 to vector<32x1xf32>
    %134 = arith.divf %132, %133 : vector<32x1xf32>
    %cst_76 = arith.constant 9.99999974E-6 : f32
    %135 = vector.broadcast %cst_76 : f32 to vector<32x1xf32>
    %136 = arith.addf %134, %135 : vector<32x1xf32>
    %137 = math.rsqrt %136 : vector<32x1xf32>
    %c0_77 = arith.constant 0 : index
    %c0_78 = arith.constant 0 : index
    %138 = vector.load %arg8[%c0_77, %c0_78] : memref<32x1xf32, #tpu.memory_space<vmem>>, vector<32x1xf32>
    %139 = arith.mulf %137, %138 : vector<32x1xf32>
    %140 = vector.broadcast %139 : vector<32x1xf32> to vector<32x128xf32>
    %141 = arith.mulf %129, %140 : vector<32x128xf32>
    %c0_79 = arith.constant 0 : index
    %c0_80 = arith.constant 0 : index
    %142 = vector.load %arg9[%c0_79, %c0_80] : memref<32x1xf32, #tpu.memory_space<vmem>>, vector<32x1xf32>
    %143 = vector.broadcast %142 : vector<32x1xf32> to vector<32x128xf32>
    %144 = arith.addf %141, %143 : vector<32x128xf32>
    %145 = arith.addf %144, %0 : vector<32x128xf32>
    %cst_81 = arith.constant 0.000000e+00 : f32
    %146 = vector.broadcast %cst_81 : f32 to vector<32x128xf32>
    %147 = arith.cmpf ogt, %145, %146 : vector<32x128xf32>
    %148 = math.exp %145 : vector<32x128xf32>
    %cst_82 = arith.constant 1.000000e+00 : f32
    %149 = vector.broadcast %cst_82 : f32 to vector<32x128xf32>
    %150 = arith.subf %148, %149 : vector<32x128xf32>
    %cst_83 = arith.constant 1.67326319 : f32
    %151 = vector.broadcast %cst_83 : f32 to vector<32x128xf32>
    %152 = arith.mulf %151, %150 : vector<32x128xf32>
    %153 = arith.select %147, %145, %152 : vector<32x128xi1>, vector<32x128xf32>
    %cst_84 = arith.constant 1.05070102 : f32
    %154 = vector.broadcast %cst_84 : f32 to vector<32x128xf32>
    %155 = arith.mulf %154, %153 : vector<32x128xf32>
    %c0_85 = arith.constant 0 : index
    %c0_86 = arith.constant 0 : index
    %156 = vector.load %arg10[%c0_85, %c0_86] : memref<32x128xf32, #tpu.memory_space<vmem>>, vector<32x128xf32>
    tpu.vector_store %arg10[%c0_85, %c0_86], %155 {strides = array<i32>} : memref<32x128xf32, #tpu.memory_space<vmem>>, vector<32x128xf32>,
    return
  }
}

</mosaic_0001>

<bundles_post_ra>
// kernel: tpu_custom_call.1
= control target key start
LH: loop header
LB: loop body
LE: loop exit
PB: predicated region body
PF: predicated region fallthrough
CT: control target
= control target key end

     0   :  { %15 = vsyncpa [#allocation3], 0  ;;  %s1818_s0 = inlined_call_operand.hbm [shape: f32[32,128], index: 0, kind: input, shape index: {}]   ;;  %s1819_s1 = inlined_call_operand.vmem [shape: f32[9,1,128], index: 1, kind: input, shape index: {}]   ;;  %s1820_s2 = inlined_call_operand.vmem [shape: f32[32,288], index: 2, kind: input, shape index: {}]   ;;  %s1821_s3 = inlined_call_operand.vmem [shape: f32[32,1], index: 3, kind: input, shape index: {}]   ;;  %s1822_s4 = inlined_call_operand.vmem [shape: f32[32,1], index: 4, kind: input, shape index: {}]   ;;  %s1823_s5 = inlined_call_operand.vmem [shape: f32[32,1], index: 5, kind: input, shape index: {}]   ;;  %s1824_s6 = inlined_call_operand.vmem [shape: f32[32,288], index: 6, kind: input, shape index: {}]   ;;  %s1825_s7 = inlined_call_operand.vmem [shape: f32[32,1], index: 7, kind: input, shape index: {}]   ;;  %s1826_s8 = inlined_call_operand.vmem [shape: f32[32,1], index: 8, kind: input, shape index: {}]   ;;  %s1827_s9 = inlined_call_operand.vmem [shape: f32[32,1], index: 9, kind: input, shape index: {}]   ;;  %s1828_s10 = inlined_call_operand.hbm [shape: f32[32,128], index: 10, kind: output, shape index: {}]  }
   0x1   :  { %16 = vsyncpa [#allocation4], 0  ;;  %s1369_s13 = smov [#allocation2]   ;;  %s1321_s17 = scalar_lea.hbm %s1818_s0, 512 }
   0x2   :  { %s22_s14 = sshll.u32 %s1369_s13, 4  ;;  %p1322_p0 = scmp.ne.s32.totalorder %s1818_s0, %s1321_s17  ;;  %s23_s14 = int_to_ptr.vmem [resolvable:$true] %s22_s14 }
   0x3   :  { %p1325_p1 = scmp.lt.u32.totalorder %s1321_s17, %s1818_s0 }
   0x5   :  { %p1327_p2 = pnand %p1325_p1, %p1322_p0 }
   0x7   :  { %1330 = shalt.err (!%p1327_p2)
}
   0x8   :  { %s1331_s22 = scalar_lea.vmem %s23_s14, 512  ;;  %p1336_p4 = scmp.lt.s32.totalorder %s23_s14, %s23_s14 }
   0x9   :  { %p1332_p3 = scmp.ne.s32.totalorder %s23_s14, %s1331_s22  ;;  %p1337_p5 = scmp.lt.s32.totalorder %s1331_s22, %s1331_s22 }
   0xb   :  { %p1338_p6 = por %p1337_p5, %p1336_p4 }
   0xd   :  { %p1339_p7 = pnand %p1338_p6, %p1332_p3 }
   0xf   :  { %1342 = shalt.err (!%p1339_p7)
}
  0x10   :  { %s1370_s23 = smov 128   ;;  %s1371_s24 = smov 8  }
  0x11   :  { %28 = dma.hbm_to_vmem [thread:$0]  %s1818_s0, 512, %s23_s14, [#allocation3], %s1370_s23, %s1370_s23, %s1371_s24  }
  0x12   :  { %1365 = dma.done.wait [#allocation3], 512  }
  0x13   :  { %1366 = vsyncadd [#allocation3], 4294966784  ;;  %v1451_v0 = vld [vmem:[#allocation2 + $0x10] sm:$0xff]  ;;  %v50_v1 = vld [vmem:[#allocation2] sm:$0xff]  ;;  %s1372_s27 = smov 9   ;;  %s1373_s0 = smov 127  }
  0x14   :  { %58 = vrot.lane.b32.xlu1 %v1451_v0, %s1372_s27  ;;  %54 = vrot.lane.b32.xlu0 %v50_v1, %s1372_s27  ;;  %v51_v2 = vld [vmem:[#allocation2 + $0x8] sm:$0xff]  ;;  %v1456_v3 = vld [vmem:[#allocation2 + $0x18] sm:$0xff]  ;;  %s1374_s28 = smov 121   ;;  %s1375_s29 = smov 7   ;;  %v215_v6 = vld [vmem:[%s1820_s2 + $0x10] sm:$0xff]  ;;  %vm249_vm0 = vcmask 261120  }
  0x15   :  { %v1191_v4 = vpack.c.bf16 %v51_v2, %v50_v1  ;;  %s1376_s30 = smov 120   ;;  %v214_v5 = vld [vmem:[%s1820_s2 + $0x8] sm:$0xff]  ;;  %s1377_s13 = smov 1   ;;  %1171 = vmatprep.mubr.msk.f32.mxu1 %vm249_vm0, %v215_v6  ;;  %v1379_v7 = vmov 0   ;;  %v225_v8 = vld [vmem:[%s1821_s3] sm:$0xff]  ;;  %v227_v10 = vld [vmem:[%s1821_s3 + $0x10] sm:$0xff]  ;;  %v1195_v20 = vpack.c.bf16 %v1456_v3, %v1451_v0 }
  0x16   :  { %326 = vmatprep.mubr.f32.mxu0 %v214_v5  ;;  %s1378_s16 = smov 119   ;;  %1283 = vset.pattern.permute.xlu0 %v1379_v7  ;;  %v226_v9 = vld [vmem:[%s1821_s3 + $0x8] sm:$0xff]  ;;  %v228_v11 = vld [vmem:[%s1821_s3 + $0x18] sm:$0xff]  ;;  %v1525_v14 = vld [vmem:[%s1819_s1] ss:$0 sm:$0xff] }
  0x17   :  { %1192 = vmatprep.subr.bf16.mxu0 %v1191_v4  ;;  %1284 = vset.pattern.permute.xlu1 %v1379_v7  ;;  %v1532_v19 = vld [vmem:[%s1819_s1 + $0x5] ss:$0 sm:$0xff]  ;;  %v1543_v28 = vld [vmem:[%s1819_s1 + $0x1] ss:$0 sm:$0xff]  ;;  %v1554_v45 = vld [vmem:[%s1819_s1 + $0x6] ss:$0 sm:$0xff] }
  0x18   :  { %60 = vrot.lane.b32.xlu1 %v1456_v3, %s1372_s27  ;;  %56 = vrot.lane.b32.xlu0 %v51_v2, %s1372_s27  ;;  %v1561_v51 = vld [vmem:[%s1819_s1 + $0x2] ss:$0 sm:$0xff] }
  0x1c   :  { %135 = vrot.lane.b32.xlu1 %v51_v2, %s1373_s0  ;;  %133 = vrot.lane.b32.xlu0 %v50_v1, %s1373_s0 }
  0x20   :  { %75 = vrot.lane.b32.xlu1 %v51_v2, %s1371_s24  ;;  %73 = vrot.lane.b32.xlu0 %v50_v1, %s1371_s24 }
  0x24   :  { %139 = vrot.lane.b32.xlu1 %v1456_v3, %s1373_s0  ;;  %137 = vrot.lane.b32.xlu0 %v1451_v0, %s1373_s0 }
  0x28   :  { %79 = vrot.lane.b32.xlu1 %v1456_v3, %s1371_s24  ;;  %77 = vrot.lane.b32.xlu0 %v1451_v0, %s1371_s24 }
  0x2c   :  { %155 = vrot.lane.b32.xlu1 %v51_v2, %s1374_s28  ;;  %153 = vrot.lane.b32.xlu0 %v50_v1, %s1374_s28 }
  0x30   :  { %95 = vrot.lane.b32.xlu1 %v51_v2, %s1375_s29  ;;  %93 = vrot.lane.b32.xlu0 %v50_v1, %s1375_s29 }
  0x34   :  { %159 = vrot.lane.b32.xlu1 %v1456_v3, %s1374_s28  ;;  %157 = vrot.lane.b32.xlu0 %v1451_v0, %s1374_s28 }
  0x38   :  { %99 = vrot.lane.b32.xlu1 %v1456_v3, %s1375_s29  ;;  %97 = vrot.lane.b32.xlu0 %v1451_v0, %s1375_s29 }
  0x3c   :  { %175 = vrot.lane.b32.xlu1 %v51_v2, %s1376_s30  ;;  %173 = vrot.lane.b32.xlu0 %v50_v1, %s1376_s30 }
  0x40   :  { %115 = vrot.lane.b32.xlu1 %v51_v2, %s1377_s13  ;;  %113 = vrot.lane.b32.xlu0 %v50_v1, %s1377_s13 }
  0x44   :  { %179 = vrot.lane.b32.xlu1 %v1456_v3, %s1376_s30  ;;  %177 = vrot.lane.b32.xlu0 %v1451_v0, %s1376_s30 }
  0x48   :  { %119 = vrot.lane.b32.xlu1 %v1456_v3, %s1377_s13  ;;  %117 = vrot.lane.b32.xlu0 %v1451_v0, %s1377_s13 }
  0x4c   :  { %195 = vrot.lane.b32.xlu1 %v51_v2, %s1378_s16  ;;  %193 = vrot.lane.b32.xlu0 %v50_v1, %s1378_s16 }
  0x50   :  { %199 = vrot.lane.b32.xlu1 %v1456_v3, %s1378_s16  ;;  %197 = vrot.lane.b32.xlu0 %v1451_v0, %s1378_s16  ;;  %v1572_v3 = vld [vmem:[%s1819_s1 + $0x7] ss:$0 sm:$0xff] }
  0x54   :  { %231 = vperm.xlu0 %1283, %v225_v8   ;;  %236 = vperm.xlu1 %1284, %v226_v9   ;;  %v1579_v9 = vld [vmem:[%s1819_s1 + $0x3] ss:$0 sm:$0xff] }
  0x58   :  { %241 = vperm.xlu1 %1284, %v227_v10   ;;  %246 = vperm.xlu0 %1283, %v228_v11  }
  0x86   :  { %v59_v12 = vpop.permute.xlu1 %58  ;;  %v55_v13 = vpop.permute.xlu0 %54 }
  0x87   :  { %v69_v17 = vmul.f32 %v1525_v14, %v55_v13  ;;  %v71_v25 = vmul.f32 %v1525_v14, %v59_v12 }
  0x8a   :  { %v61_v15 = vpop.permute.xlu1 %60  ;;  %v57_v16 = vpop.permute.xlu0 %56 }
  0x8b   :  { %v70_v18 = vmul.f32 %v1525_v14, %v57_v16  ;;  %v72_v21 = vmul.f32 %v1525_v14, %v61_v15 }
  0x8d   :  { %v1193_v22 = vpack.c.bf16 %v70_v18, %v69_v17  ;;  %v1197_v29 = vpack.c.bf16 %v72_v21, %v71_v25 }
  0x8e   :  { %v136_v23 = vpop.permute.xlu1 %135  ;;  %v134_v24 = vpop.permute.xlu0 %133 }
  0x8f   :  { %v150_v26 = vmul.f32 %v1532_v19, %v136_v23  ;;  %v149_v27 = vmul.f32 %v1532_v19, %v134_v24  ;;  %1194 = vmatpush3.bf16.msra.mxu0 %v1193_v22 }
  0x90   :  { %1196 = vmatprep.subr.bf16.mxu0 %v1195_v20 }
  0x91   :  { %v1199_v30 = vpack.c.bf16 %v150_v26, %v149_v27  ;;  %v1590_v27 = vld [vmem:[%s1819_s1 + $0x8] ss:$0 sm:$0xff] }
  0x92   :  { %v76_v31 = vpop.permute.xlu1 %75  ;;  %v74_v32 = vpop.permute.xlu0 %73 }
  0x93   :  { %v90_v33 = vmul.f32 %v1543_v28, %v76_v31  ;;  %v89_v34 = vmul.f32 %v1543_v28, %v74_v32  ;;  %1198 = vmatpush3.bf16.msra.mxu0 %v1197_v29 }
  0x94   :  { %1200 = vmatprep.subr.bf16.mxu0 %v1199_v30 }
  0x95   :  { %v1201_v35 = vpack.c.bf16 %v90_v33, %v89_v34  ;;  %v213_v34 = vld [vmem:[%s1820_s2] sm:$0xff] }
  0x96   :  { %v140_v36 = vpop.permute.xlu1 %139  ;;  %v138_v37 = vpop.permute.xlu0 %137 }
  0x97   :  { %v152_v38 = vmul.f32 %v1532_v19, %v140_v36  ;;  %v151_v39 = vmul.f32 %v1532_v19, %v138_v37  ;;  %1202 = vmatpush3.bf16.msra.mxu0 %v1201_v35  ;;  %v217_v35 = vld [vmem:[%s1820_s2 + $0x20] sm:$0xff] }
  0x99   :  { %v1203_v40 = vpack.c.bf16 %v152_v38, %v151_v39 }
  0x9a   :  { %v80_v41 = vpop.permute.xlu1 %79  ;;  %v78_v42 = vpop.permute.xlu0 %77 }
  0x9b   :  { %v92_v43 = vmul.f32 %v1543_v28, %v80_v41  ;;  %v91_v44 = vmul.f32 %v1543_v28, %v78_v42  ;;  %1204 = vmatprep.subr.bf16.mxu0 %v1203_v40  ;;  %v216_v41 = vld [vmem:[%s1820_s2 + $0x18] sm:$0xff] }
  0x9c   :  { %v220_v42 = vld [vmem:[%s1820_s2 + $0x38] sm:$0xff] }
  0x9d   :  { %v1205_v46 = vpack.c.bf16 %v92_v43, %v91_v44  ;;  %v219_v44 = vld [vmem:[%s1820_s2 + $0x30] sm:$0xff] }
  0x9e   :  { %v156_v47 = vpop.permute.xlu1 %155  ;;  %v154_v48 = vpop.permute.xlu0 %153 }
  0x9f   :  { %v170_v49 = vmul.f32 %v1554_v45, %v156_v47  ;;  %v169_v50 = vmul.f32 %v1554_v45, %v154_v48  ;;  %1206 = vmatpush3.bf16.msra.mxu0 %v1205_v46  ;;  %v218_v46 = vld [vmem:[%s1820_s2 + $0x28] sm:$0xff]  ;;  %v223_v47 = vld [vmem:[%s1820_s2 + $0x50] sm:$0xff]  ;;  %v221_v48 = vld [vmem:[%s1820_s2 + $0x40] sm:$0xff] }
  0xa1   :  { %v1207_v52 = vpack.c.bf16 %v170_v49, %v169_v50  ;;  %v222_v49 = vld [vmem:[%s1820_s2 + $0x48] sm:$0xff]  ;;  %v224_v50 = vld [vmem:[%s1820_s2 + $0x58] sm:$0xff] }
  0xa2   :  { %v96_v53 = vpop.permute.xlu1 %95  ;;  %v94_v54 = vpop.permute.xlu0 %93 }
  0xa3   :  { %v110_v55 = vmul.f32 %v1561_v51, %v96_v53  ;;  %v109_v56 = vmul.f32 %v1561_v51, %v94_v54  ;;  %1208 = vmatprep.subr.bf16.mxu0 %v1207_v52 }
  0xa5   :  { %v1209_v57 = vpack.c.bf16 %v110_v55, %v109_v56 }
  0xa6   :  { %v160_v58 = vpop.permute.xlu1 %159  ;;  %v158_v59 = vpop.permute.xlu0 %157 }
  0xa7   :  { %v172_v60 = vmul.f32 %v1554_v45, %v160_v58  ;;  %v171_v61 = vmul.f32 %v1554_v45, %v158_v59  ;;  %1210 = vmatpush3.bf16.msra.mxu0 %v1209_v57 }
  0xa9   :  { %v1211_v62 = vpack.c.bf16 %v172_v60, %v171_v61 }
  0xaa   :  { %v100_v63 = vpop.permute.xlu1 %99  ;;  %v98_v0 = vpop.permute.xlu0 %97 }
  0xab   :  { %v112_v1 = vmul.f32 %v1561_v51, %v100_v63  ;;  %v111_v2 = vmul.f32 %v1561_v51, %v98_v0  ;;  %1212 = vmatprep.subr.bf16.mxu0 %v1211_v62 }
  0xad   :  { %v1213_v4 = vpack.c.bf16 %v112_v1, %v111_v2 }
  0xae   :  { %v176_v5 = vpop.permute.xlu1 %175  ;;  %v174_v6 = vpop.permute.xlu0 %173 }
  0xaf   :  { %v190_v7 = vmul.f32 %v1572_v3, %v176_v5  ;;  %v189_v8 = vmul.f32 %v1572_v3, %v174_v6  ;;  %1214 = vmatpush3.bf16.msra.mxu0 %v1213_v4 }
  0xb1   :  { %v1215_v10 = vpack.c.bf16 %v190_v7, %v189_v8 }
  0xb2   :  { %v116_v11 = vpop.permute.xlu1 %115  ;;  %v114_v12 = vpop.permute.xlu0 %113 }
  0xb3   :  { %v130_v13 = vmul.f32 %v1579_v9, %v116_v11  ;;  %v129_v15 = vmul.f32 %v1579_v9, %v114_v12  ;;  %1216 = vmatprep.subr.bf16.mxu0 %v1215_v10 }
  0xb5   :  { %v1217_v16 = vpack.c.bf16 %v130_v13, %v129_v15 }
  0xb6   :  { %v180_v17 = vpop.permute.xlu1 %179  ;;  %v178_v18 = vpop.permute.xlu0 %177 }
  0xb7   :  { %v192_v20 = vmul.f32 %v1572_v3, %v180_v17  ;;  %v191_v21 = vmul.f32 %v1572_v3, %v178_v18  ;;  %1218 = vmatpush3.bf16.msra.mxu0 %v1217_v16 }
  0xb9   :  { %v1219_v22 = vpack.c.bf16 %v192_v20, %v191_v21 }
  0xba   :  { %v120_v23 = vpop.permute.xlu1 %119  ;;  %v118_v24 = vpop.permute.xlu0 %117 }
  0xbb   :  { %v132_v25 = vmul.f32 %v1579_v9, %v120_v23  ;;  %v131_v26 = vmul.f32 %v1579_v9, %v118_v24  ;;  %1220 = vmatprep.subr.bf16.mxu0 %v1219_v22 }
  0xbd   :  { %v1221_v29 = vpack.c.bf16 %v132_v25, %v131_v26 }
  0xbe   :  { %v196_v30 = vpop.permute.xlu1 %195  ;;  %v194_v31 = vpop.permute.xlu0 %193 }
  0xbf   :  { %v210_v32 = vmul.f32 %v1590_v27, %v196_v30  ;;  %v209_v33 = vmul.f32 %v1590_v27, %v194_v31  ;;  %1222 = vmatpush3.bf16.msra.mxu0 %v1221_v29 }
  0xc1   :  { %v1223_v36 = vpack.c.bf16 %v210_v32, %v209_v33 }
  0xc2   :  { %v200_v37 = vpop.permute.xlu1 %199  ;;  %v198_v38 = vpop.permute.xlu0 %197  ;;  %327 = vmatmul.mubr.f32.vlgmr.msra.gmra.mrb[0].mxu0 %v213_v34 }
  0xc3   :  { %v212_v39 = vmul.f32 %v1590_v27, %v200_v37  ;;  %v211_v40 = vmul.f32 %v1590_v27, %v198_v38  ;;  %1224 = vmatprep.subr.bf16.mxu1 %v1223_v36  ;;  %331 = vmatprep.mubr.f32.mxu0 %v217_v35  ;;  %v505_v38 = vld [vmem:[%s1823_s5] sm:$0xff] }
  0xc4   :  { %1226 = vmatpush3.bf16.msra.mxu1 %v1223_v36 }
  0xc5   :  { %v1227_v43 = vpack.c.bf16 %v212_v39, %v211_v40  ;;  %v506_v39 = vld [vmem:[%s1823_s5 + $0x8] sm:$0xff] }
  0xc6   :  { %332 = vmatmul.mubr.f32.gmra.mrb[2].mxu0 %v216_v41 }
  0xc7   :  { %1228 = vmatprep.subr.bf16.mxu1 %v1227_v43  ;;  %336 = vmatprep.mubr.f32.mxu0 %v220_v42 }
  0xc8   :  { %1230 = vmatpush3.bf16.msra.mxu1 %v1227_v43 }
  0xca   :  { %337 = vmatmul.mubr.f32.gmra.mrb[4].mxu0 %v219_v44 }
  0xcb   :  { %1172 = vmatmul.mubr.msk.f32.vlgmr.msra.gmra.mrb[0].mxu1 %vm249_vm0, %v218_v46  ;;  %341 = vmatprep.mubr.f32.mxu0 %v223_v47 }
  0xcc   :  { %1174 = vmatprep.mubr.msk.f32.mxu1 %vm249_vm0, %v221_v48 }
  0xce   :  { %342 = vmatmul.mubr.f32.gmra.mrb[6].mxu0 %v222_v49 }
  0xcf   :  { %1175 = vmatmul.mubr.msk.f32.gmra.mrb[2].mxu1 %vm249_vm0, %v224_v50 }
  0xd3   :  { %v237_v56 = vpop.permute.xlu1 %236  ;;  %v232_v58 = vpop.permute.xlu0 %231 }
  0xd7   :  { %v242_v5 = vpop.permute.xlu1 %241  ;;  %v247_v15 = vpop.permute.xlu0 %246 }
 0x195   :  { %v1091_v52 = vpop.f32.mrb[0].mxu0 }
 0x196   :  { %v1092_v53 = vpop.f32.mrb[1].mxu0 }
 0x197   :  { %v1093_v54 = vadd.f32 %v1092_v53, %v1091_v52 }
 0x199   :  { %v1094_v55 = vpop.f32.mrb[2].mxu0  ;;  %v329_v62 = vadd.f32 %v1093_v54, %v232_v58  ;;  %v474_v54 = vld [vmem:[%s1822_s4 + $0x8] sm:$0xff] }
 0x19a   :  { %v1095_v57 = vpop.f32.mrb[3].mxu0 }
 0x19b   :  { %v1096_v59 = vadd.f32 %v1095_v57, %v1094_v55  ;;  %v473_v55 = vld [vmem:[%s1822_s4] sm:$0xff] }
 0x19d   :  { %v1097_v60 = vpop.f32.mrb[4].mxu0  ;;  %v334_v61 = vadd.f32 %v1096_v59, %v237_v56 }
 0x19e   :  { %v1098_v63 = vpop.f32.mrb[5].mxu0  ;;  %v1173_v0 = vpop.f32.mrb[0].mxu1 }
 0x19f   :  { %v1099_v1 = vadd.f32 %v1098_v63, %v1097_v60  ;;  %v419_v2 = vadd.f32 %v1173_v0, %v334_v61  ;;  %v413_v4 = vpop.f32.mrb[1].mxu1  ;;  %v475_v60 = vld [vmem:[%s1822_s4 + $0x10] sm:$0xff]  ;;  %v476_v63 = vld [vmem:[%s1822_s4 + $0x18] sm:$0xff] }
 0x1a0   :  { %v414_v6 = vadd.f32 %v413_v4, %v329_v62  ;;  %v508_v4 = vld [vmem:[%s1823_s5 + $0x18] sm:$0xff] }
 0x1a1   :  { %v1100_v7 = vpop.f32.mrb[6].mxu0  ;;  %434 = vadd.xlane.f32.xlu0 %v419_v2  ;;  %v339_v8 = vadd.f32 %v1099_v1, %v242_v5 }
 0x1a2   :  { %v1101_v10 = vpop.f32.mrb[7].mxu0  ;;  %v1176_v11 = vpop.f32.mrb[2].mxu1  ;;  %432 = vadd.xlane.f32.xlu1 %v414_v6 }
 0x1a3   :  { %v1102_v12 = vadd.f32 %v1101_v10, %v1100_v7  ;;  %v423_v13 = vpop.f32.mrb[3].mxu1 }
 0x1a4   :  { %v424_v16 = vadd.f32 %v423_v13, %v339_v8 }
 0x1a5   :  { %v344_v17 = vadd.f32 %v1102_v12, %v247_v15 }
 0x1a6   :  { %436 = vadd.xlane.f32.xlu0 %v424_v16 }
 0x1a7   :  { %v429_v18 = vadd.f32 %v1176_v11, %v344_v17 }
 0x1a9   :  { %438 = vadd.xlane.f32.xlu1 %v429_v18 }
 0x22e   :  { %v435_v20 = vpop.xlane.xlu0 %434 }
 0x22f   :  { %v442_v21 = vmul.f32 0.0078125, %v435_v20  ;;  %v433_v22 = vpop.xlane.xlu1 %432 }
 0x230   :  { %v441_v23 = vmul.f32 0.0078125, %v433_v22 }
 0x231   :  { %v446_v24 = vsub.f32 %v419_v2, %v442_v21  ;;  %v507_v2 = vld [vmem:[%s1823_s5 + $0x10] sm:$0xff] }
 0x232   :  { %v445_v25 = vsub.f32 %v414_v6, %v441_v23 }
 0x233   :  { %v437_v26 = vpop.xlane.xlu0 %436  ;;  %v450_v29 = vmul.f32 %v446_v24, %v446_v24 }
 0x234   :  { %v443_v30 = vmul.f32 0.0078125, %v437_v26  ;;  %v449_v31 = vmul.f32 %v445_v25, %v445_v25 }
 0x235   :  { %455 = vadd.xlane.f32.xlu1 %v450_v29 }
 0x236   :  { %v447_v32 = vsub.f32 %v424_v16, %v443_v30  ;;  %453 = vadd.xlane.f32.xlu0 %v449_v31  ;;  %v439_v33 = vpop.xlane.xlu1 %438 }
 0x237   :  { %v444_v34 = vmul.f32 0.0078125, %v439_v33 }
 0x238   :  { %v451_v35 = vmul.f32 %v447_v32, %v447_v32 }
 0x239   :  { %v448_v36 = vsub.f32 %v429_v18, %v444_v34 }
 0x23a   :  { %457 = vadd.xlane.f32.xlu0 %v451_v35 }
 0x23b   :  { %v452_v37 = vmul.f32 %v448_v36, %v448_v36 }
 0x23d   :  { %459 = vadd.xlane.f32.xlu1 %v452_v37 }
 0x24e   :  { %511 = vperm.xlu1 %1284, %v505_v38  }
 0x250   :  { %516 = vperm.xlu0 %1283, %v506_v39  }
 0x2c2   :  { %v456_v40 = vpop.xlane.xlu1 %455 }
 0x2c3   :  { %v462_v41 = vmul.f32 0.0078125, %v456_v40  ;;  %v454_v42 = vpop.xlane.xlu0 %453 }
 0x2c4   :  { %v461_v43 = vmul.f32 0.0078125, %v454_v42 }
 0x2c5   :  { %v466_v44 = vadd.f32 1e-05, %v462_v41 }
 0x2c6   :  { %v465_v46 = vadd.f32 1e-05, %v461_v43 }
 0x2c7   :  { %1285 = vrsqrt.f32 %v466_v44  ;;  %v458_v47 = vpop.xlane.xlu0 %457 }
 0x2c8   :  { %1287 = vrsqrt.f32 %v465_v46  ;;  %v463_v48 = vmul.f32 0.0078125, %v458_v47 }
 0x2ca   :  { %v467_v49 = vadd.f32 1e-05, %v463_v48  ;;  %v460_v50 = vpop.xlane.xlu1 %459 }
 0x2cb   :  { %v464_v52 = vmul.f32 0.0078125, %v460_v50 }
 0x2cc   :  { %1289 = vrsqrt.f32 %v467_v49 }
 0x2cd   :  { %v468_v53 = vadd.f32 1e-05, %v464_v52 }
 0x2ce   :  { %v512_v5 = vpop.permute.xlu1 %511 }
 0x2cf   :  { %1291 = vrsqrt.f32 %v468_v53  ;;  %v517_v6 = vpop.permute.xlu0 %516 }
 0x2d1   :  { %v1286_v56 = vpop.eup %1285 }
 0x2d2   :  { %v1288_v57 = vpop.eup %1287  ;;  %v478_v58 = vmul.f32 %v1286_v56, %v474_v54  ;;  %v658_v54 = vld [vmem:[%s1824_s6 + $0x8] sm:$0xff] }
 0x2d3   :  { %v477_v59 = vmul.f32 %v1288_v57, %v473_v55  ;;  %769 = vmatprep.mubr.f32.mxu1 %v658_v54  ;;  %v659_v55 = vld [vmem:[%s1824_s6 + $0x10] sm:$0xff]  ;;  %v670_v56 = vld [vmem:[%s1825_s7 + $0x8] sm:$0xff]  ;;  %v669_v57 = vld [vmem:[%s1825_s7] sm:$0xff] }
 0x2d4   :  { %488 = vperm.xlu1 %1284, %v478_v58   ;;  %1185 = vmatprep.mubr.msk.f32.mxu0 %vm249_vm0, %v659_v55  ;;  %v672_v58 = vld [vmem:[%s1825_s7 + $0x18] sm:$0xff] }
 0x2d5   :  { %483 = vperm.xlu0 %1283, %v477_v59   ;;  %v671_v59 = vld [vmem:[%s1825_s7 + $0x10] sm:$0xff] }
 0x2d6   :  { %v1290_v61 = vpop.eup %1289 }
 0x2d7   :  { %v479_v62 = vmul.f32 %v1290_v61, %v475_v60 }
 0x2d9   :  { %v1292_v0 = vpop.eup %1291  ;;  %493 = vperm.xlu1 %1284, %v479_v62  }
 0x2da   :  { %v480_v1 = vmul.f32 %v1292_v0, %v476_v63 }
 0x2dc   :  { %498 = vperm.xlu0 %1283, %v480_v1  }
 0x2dd   :  { %521 = vperm.xlu1 %1284, %v507_v2  }
 0x2e0   :  { %526 = vperm.xlu0 %1283, %v508_v4  }
 0x353   :  { %v489_v7 = vpop.permute.xlu1 %488 }
 0x354   :  { %v502_v8 = vmul.f32 %v489_v7, %v446_v24  ;;  %v484_v10 = vpop.permute.xlu0 %483 }
 0x355   :  { %v501_v11 = vmul.f32 %v484_v10, %v445_v25 }
 0x356   :  { %v530_v12 = vadd.f32 %v517_v6, %v502_v8 }
 0x357   :  { %v529_v13 = vadd.f32 %v512_v5, %v501_v11 }
 0x358   :  { %v539_v15 = vmul.f32 1.442695, %v530_v12  ;;  %v494_v16 = vpop.permute.xlu1 %493  ;;  %vm534_vm1 = vcmp.gt.f32.partialorder %v530_v12, 0.0 }
 0x359   :  { %v537_v17 = vmul.f32 1.442695, %v529_v13  ;;  %v503_v18 = vmul.f32 %v494_v16, %v447_v32  ;;  %vm533_vm2 = vcmp.gt.f32.partialorder %v529_v13, 0.0 }
 0x35a   :  { %1293 = vpow2.f32 %v539_v15 }
 0x35b   :  { %1295 = vpow2.f32 %v537_v17  ;;  %v499_v20 = vpop.permute.xlu0 %498 }
 0x35c   :  { %v522_v21 = vpop.permute.xlu1 %521  ;;  %v504_v23 = vmul.f32 %v499_v20, %v448_v36 }
 0x35d   :  { %v531_v22 = vadd.f32 %v522_v21, %v503_v18 }
 0x35f   :  { %v541_v26 = vmul.f32 1.442695, %v531_v22  ;;  %v527_v29 = vpop.permute.xlu0 %526  ;;  %vm535_vm3 = vcmp.gt.f32.partialorder %v531_v22, 0.0 }
 0x360   :  { %v532_v30 = vadd.f32 %v527_v29, %v504_v23 }
 0x361   :  { %1297 = vpow2.f32 %v541_v26 }
 0x362   :  { %v543_v31 = vmul.f32 1.442695, %v532_v30  ;;  %vm536_vm4 = vcmp.gt.f32.partialorder %v532_v30, 0.0 }
 0x364   :  { %v1294_v24 = vpop.eup %1293  ;;  %1299 = vpow2.f32 %v543_v31 }
 0x365   :  { %v1296_v25 = vpop.eup %1295  ;;  %v1048_v33 = vadd.f32 -1.0, %v1294_v24 }
 0x366   :  { %v1047_v34 = vadd.f32 -1.0, %v1296_v25 }
 0x367   :  { %v550_v35 = vmul.f32 1.6732632, %v1048_v33 }
 0x368   :  { %v549_v37 = vmul.f32 1.6732632, %v1047_v34 }
 0x369   :  { %v554_v38 = vsel %vm534_vm1, %v530_v12, %v550_v35 }
 0x36a   :  { %v558_v32 = vmul.f32 1.050701, %v554_v38  ;;  %v553_v39 = vsel %vm533_vm2, %v529_v13, %v549_v37 }
 0x36b   :  { %v1298_v40 = vpop.eup %1297  ;;  %v557_v41 = vmul.f32 1.050701, %v553_v39 }
 0x36c   :  { %v1049_v36 = vadd.f32 -1.0, %v1298_v40  ;;  %563 = vrot.lane.b32.xlu0 %v558_v32, %s1372_s27 }
 0x36d   :  { %561 = vrot.lane.b32.xlu1 %v557_v41, %s1372_s27  ;;  %v1231_v42 = vpack.c.bf16 %v558_v32, %v557_v41 }
 0x36e   :  { %v1300_v43 = vpop.eup %1299  ;;  %v551_v44 = vmul.f32 1.6732632, %v1049_v36 }
 0x36f   :  { %v1050_v46 = vadd.f32 -1.0, %v1300_v43  ;;  %1232 = vmatprep.subr.bf16.mxu1 %v1231_v42 }
 0x370   :  { %611 = vrot.lane.b32.xlu0 %v558_v32, %s1373_s0  ;;  %v555_v47 = vsel %vm535_vm3, %v531_v22, %v551_v44 }
 0x371   :  { %v552_v48 = vmul.f32 1.6732632, %v1050_v46  ;;  %609 = vrot.lane.b32.xlu1 %v557_v41, %s1373_s0  ;;  %v559_v50 = vmul.f32 1.050701, %v555_v47 }
 0x373   :  { %v556_v49 = vsel %vm536_vm4, %v532_v30, %v552_v48 }
 0x374   :  { %v560_v52 = vmul.f32 1.050701, %v556_v49  ;;  %575 = vrot.lane.b32.xlu0 %v558_v32, %s1371_s24 }
 0x375   :  { %573 = vrot.lane.b32.xlu1 %v557_v41, %s1371_s24 }
 0x376   :  { %v1235_v53 = vpack.c.bf16 %v560_v52, %v559_v50 }
 0x378   :  { %623 = vrot.lane.b32.xlu0 %v558_v32, %s1374_s28 }
 0x379   :  { %621 = vrot.lane.b32.xlu1 %v557_v41, %s1374_s28 }
 0x37c   :  { %587 = vrot.lane.b32.xlu0 %v558_v32, %s1375_s29 }
 0x37d   :  { %585 = vrot.lane.b32.xlu1 %v557_v41, %s1375_s29 }
 0x380   :  { %635 = vrot.lane.b32.xlu0 %v558_v32, %s1376_s30 }
 0x381   :  { %633 = vrot.lane.b32.xlu1 %v557_v41, %s1376_s30 }
 0x384   :  { %599 = vrot.lane.b32.xlu0 %v558_v32, %s1377_s13 }
 0x385   :  { %597 = vrot.lane.b32.xlu1 %v557_v41, %s1377_s13 }
 0x388   :  { %567 = vrot.lane.b32.xlu0 %v560_v52, %s1372_s27 }
 0x389   :  { %565 = vrot.lane.b32.xlu1 %v559_v50, %s1372_s27 }
 0x38c   :  { %615 = vrot.lane.b32.xlu0 %v560_v52, %s1373_s0 }
 0x38d   :  { %613 = vrot.lane.b32.xlu1 %v559_v50, %s1373_s0 }
 0x390   :  { %579 = vrot.lane.b32.xlu0 %v560_v52, %s1371_s24 }
 0x391   :  { %577 = vrot.lane.b32.xlu1 %v559_v50, %s1371_s24 }
 0x394   :  { %627 = vrot.lane.b32.xlu0 %v560_v52, %s1374_s28 }
 0x395   :  { %625 = vrot.lane.b32.xlu1 %v559_v50, %s1374_s28 }
 0x398   :  { %591 = vrot.lane.b32.xlu0 %v560_v52, %s1375_s29 }
 0x399   :  { %589 = vrot.lane.b32.xlu1 %v559_v50, %s1375_s29 }
 0x39c   :  { %639 = vrot.lane.b32.xlu0 %v560_v52, %s1376_s30 }
 0x39d   :  { %637 = vrot.lane.b32.xlu1 %v559_v50, %s1376_s30 }
 0x3a0   :  { %603 = vrot.lane.b32.xlu0 %v560_v52, %s1377_s13 }
 0x3a1   :  { %601 = vrot.lane.b32.xlu1 %v559_v50, %s1377_s13 }
 0x3a4   :  { %647 = vrot.lane.b32.xlu0 %v558_v32, %s1378_s16 }
 0x3a5   :  { %645 = vrot.lane.b32.xlu1 %v557_v41, %s1378_s16 }
 0x3a8   :  { %651 = vrot.lane.b32.xlu0 %v560_v52, %s1378_s16 }
 0x3a9   :  { %649 = vrot.lane.b32.xlu1 %v559_v50, %s1378_s16 }
 0x3ac   :  { %680 = vperm.xlu0 %1283, %v670_v56  }
 0x3ad   :  { %675 = vperm.xlu1 %1284, %v669_v57  }
 0x3b0   :  { %690 = vperm.xlu0 %1283, %v672_v58  }
 0x3b1   :  { %685 = vperm.xlu1 %1284, %v671_v59  }
 0x3de   :  { %v564_v60 = vpop.permute.xlu0 %563 }
 0x3df   :  { %v570_v61 = vmul.f32 %v1525_v14, %v564_v60  ;;  %v562_v62 = vpop.permute.xlu1 %561 }
 0x3e0   :  { %v569_v63 = vmul.f32 %v1525_v14, %v562_v62 }
 0x3e2   :  { %v1233_v0 = vpack.c.bf16 %v570_v61, %v569_v63  ;;  %v612_v1 = vpop.permute.xlu0 %611 }
 0x3e3   :  { %v610_v2 = vpop.permute.xlu1 %609  ;;  %v618_v17 = vmul.f32 %v1532_v19, %v612_v1 }
 0x3e4   :  { %1234 = vmatpush3.bf16.msra.mxu1 %v1233_v0  ;;  %v617_v18 = vmul.f32 %v1532_v19, %v610_v2 }
 0x3e5   :  { %1236 = vmatprep.subr.bf16.mxu1 %v1235_v53 }
 0x3e6   :  { %v576_v4 = vpop.permute.xlu0 %575  ;;  %v1239_v31 = vpack.c.bf16 %v618_v17, %v617_v18  ;;  %v660_v17 = vld [vmem:[%s1824_s6 + $0x18] sm:$0xff] }
 0x3e7   :  { %v574_v5 = vpop.permute.xlu1 %573  ;;  %v582_v23 = vmul.f32 %v1543_v28, %v576_v4  ;;  %v664_v18 = vld [vmem:[%s1824_s6 + $0x38] sm:$0xff] }
 0x3e8   :  { %v581_v26 = vmul.f32 %v1543_v28, %v574_v5 }
 0x3ea   :  { %v624_v6 = vpop.permute.xlu0 %623  ;;  %v1241_v34 = vpack.c.bf16 %v582_v23, %v581_v26  ;;  %v665_v23 = vld [vmem:[%s1824_s6 + $0x40] sm:$0xff]  ;;  %v666_v26 = vld [vmem:[%s1824_s6 + $0x48] sm:$0xff] }
 0x3eb   :  { %v622_v7 = vpop.permute.xlu1 %621  ;;  %v630_v38 = vmul.f32 %v1554_v45, %v624_v6 }
 0x3ee   :  { %v588_v8 = vpop.permute.xlu0 %587 }
 0x3ef   :  { %v586_v10 = vpop.permute.xlu1 %585  ;;  %v594_v41 = vmul.f32 %v1561_v51, %v588_v8 }
 0x3f2   :  { %v636_v11 = vpop.permute.xlu0 %635 }
 0x3f3   :  { %v634_v12 = vpop.permute.xlu1 %633 }
 0x3f4   :  { %v641_v52 = vmul.f32 %v1572_v3, %v634_v12 }
 0x3f6   :  { %v600_v13 = vpop.permute.xlu0 %599 }
 0x3f7   :  { %v598_v15 = vpop.permute.xlu1 %597  ;;  %v606_v56 = vmul.f32 %v1579_v9, %v600_v13 }
 0x3fa   :  { %v568_v16 = vpop.permute.xlu0 %567 }
 0x3fb   :  { %v572_v20 = vmul.f32 %v1525_v14, %v568_v16  ;;  %v566_v21 = vpop.permute.xlu1 %565 }
 0x3fc   :  { %v571_v22 = vmul.f32 %v1525_v14, %v566_v21  ;;  %v629_v14 = vmul.f32 %v1554_v45, %v622_v7  ;;  %v663_v21 = vld [vmem:[%s1824_s6 + $0x30] sm:$0xff] }
 0x3fe   :  { %v1237_v29 = vpack.c.bf16 %v572_v20, %v571_v22  ;;  %v616_v30 = vpop.permute.xlu0 %615  ;;  %v1247_v43 = vpack.c.bf16 %v630_v38, %v629_v14  ;;  %v667_v22 = vld [vmem:[%s1824_s6 + $0x50] sm:$0xff] }
 0x3ff   :  { %v620_v24 = vmul.f32 %v1532_v19, %v616_v30  ;;  %v614_v25 = vpop.permute.xlu1 %613 }
 0x400   :  { %v619_v33 = vmul.f32 %v1532_v19, %v614_v25  ;;  %1238 = vmatpush3.bf16.msra.mxu1 %v1237_v29  ;;  %v593_v19 = vmul.f32 %v1561_v51, %v586_v10  ;;  %v668_v29 = vld [vmem:[%s1824_s6 + $0x58] sm:$0xff] }
 0x401   :  { %1240 = vmatprep.subr.bf16.mxu1 %v1239_v31 }
 0x402   :  { %v1243_v35 = vpack.c.bf16 %v620_v24, %v619_v33  ;;  %v580_v37 = vpop.permute.xlu0 %579  ;;  %v1249_v48 = vpack.c.bf16 %v594_v41, %v593_v19 }
 0x403   :  { %v584_v32 = vmul.f32 %v1543_v28, %v580_v37  ;;  %v578_v39 = vpop.permute.xlu1 %577 }
 0x404   :  { %v583_v40 = vmul.f32 %v1543_v28, %v578_v39  ;;  %1242 = vmatpush3.bf16.msra.mxu1 %v1241_v34  ;;  %v642_v28 = vmul.f32 %v1572_v3, %v636_v11  ;;  %v661_v11 = vld [vmem:[%s1824_s6 + $0x20] sm:$0xff] }
 0x405   :  { %1244 = vmatprep.subr.bf16.mxu1 %v1243_v35 }
 0x406   :  { %v1245_v36 = vpack.c.bf16 %v584_v32, %v583_v40  ;;  %v628_v42 = vpop.permute.xlu0 %627  ;;  %v1255_v59 = vpack.c.bf16 %v642_v28, %v641_v52 }
 0x407   :  { %v632_v44 = vmul.f32 %v1554_v45, %v628_v42  ;;  %v626_v46 = vpop.permute.xlu1 %625 }
 0x408   :  { %v631_v47 = vmul.f32 %v1554_v45, %v626_v46  ;;  %1246 = vmatpush3.bf16.msra.mxu1 %v1245_v36  ;;  %v605_v45 = vmul.f32 %v1579_v9, %v598_v15 }
 0x409   :  { %1248 = vmatprep.subr.bf16.mxu1 %v1247_v43 }
 0x40a   :  { %v1251_v49 = vpack.c.bf16 %v632_v44, %v631_v47  ;;  %v592_v50 = vpop.permute.xlu0 %591  ;;  %v1257_v63 = vpack.c.bf16 %v606_v56, %v605_v45 }
 0x40b   :  { %v596_v53 = vmul.f32 %v1561_v51, %v592_v50  ;;  %v590_v54 = vpop.permute.xlu1 %589 }
 0x40c   :  { %v595_v55 = vmul.f32 %v1561_v51, %v590_v54  ;;  %1250 = vmatpush3.bf16.msra.mxu1 %v1249_v48 }
 0x40d   :  { %1252 = vmatprep.subr.bf16.mxu1 %v1251_v49 }
 0x40e   :  { %v1253_v57 = vpack.c.bf16 %v596_v53, %v595_v55  ;;  %v640_v58 = vpop.permute.xlu0 %639 }
 0x40f   :  { %v644_v60 = vmul.f32 %v1572_v3, %v640_v58  ;;  %v638_v61 = vpop.permute.xlu1 %637 }
 0x410   :  { %v643_v62 = vmul.f32 %v1572_v3, %v638_v61  ;;  %1254 = vmatpush3.bf16.msra.mxu1 %v1253_v57  ;;  %v657_v3 = vld [vmem:[%s1824_s6] sm:$0xff] }
 0x411   :  { %1256 = vmatprep.subr.bf16.mxu1 %v1255_v59 }
 0x412   :  { %v1259_v0 = vpack.c.bf16 %v644_v60, %v643_v62  ;;  %v604_v1 = vpop.permute.xlu0 %603 }
 0x413   :  { %v608_v51 = vmul.f32 %v1579_v9, %v604_v1  ;;  %v602_v2 = vpop.permute.xlu1 %601 }
 0x414   :  { %v607_v4 = vmul.f32 %v1579_v9, %v602_v2  ;;  %1258 = vmatpush3.bf16.msra.mxu1 %v1257_v63 }
 0x415   :  { %1260 = vmatprep.subr.bf16.mxu1 %v1259_v0 }
 0x416   :  { %v1261_v5 = vpack.c.bf16 %v608_v51, %v607_v4  ;;  %v648_v6 = vpop.permute.xlu0 %647 }
 0x417   :  { %v654_v7 = vmul.f32 %v1590_v27, %v648_v6  ;;  %v646_v8 = vpop.permute.xlu1 %645  ;;  %v947_v6 = vld [vmem:[%s1827_s9] sm:$0xff] }
 0x418   :  { %v653_v10 = vmul.f32 %v1590_v27, %v646_v8  ;;  %1262 = vmatpush3.bf16.msra.mxu1 %v1261_v5 }
 0x41a   :  { %v1263_v12 = vpack.c.bf16 %v654_v7, %v653_v10  ;;  %v652_v9 = vpop.permute.xlu0 %651  ;;  %v948_v7 = vld [vmem:[%s1827_s9 + $0x8] sm:$0xff] }
 0x41b   :  { %v656_v13 = vmul.f32 %v1590_v27, %v652_v9  ;;  %770 = vmatmul.mubr.f32.vlgmr.msra.gmra.mrb[4].mxu1 %v657_v3  ;;  %v650_v15 = vpop.permute.xlu1 %649 }
 0x41c   :  { %v655_v16 = vmul.f32 %v1590_v27, %v650_v15  ;;  %1264 = vmatprep.subr.bf16.mxu0 %v1263_v12  ;;  %774 = vmatprep.mubr.f32.mxu1 %v661_v11  ;;  %v662_v27 = vld [vmem:[%s1824_s6 + $0x28] sm:$0xff] }
 0x41d   :  { %1266 = vmatpush3.bf16.msra.mxu0 %v1263_v12 }
 0x41e   :  { %v1267_v20 = vpack.c.bf16 %v656_v13, %v655_v16 }
 0x41f   :  { %775 = vmatmul.mubr.f32.gmra.mrb[6].mxu1 %v660_v17 }
 0x420   :  { %1268 = vmatprep.subr.bf16.mxu0 %v1267_v20  ;;  %779 = vmatprep.mubr.f32.mxu1 %v664_v18 }
 0x421   :  { %1270 = vmatpush3.bf16.msra.mxu0 %v1267_v20 }
 0x423   :  { %780 = vmatmul.mubr.f32.gmra.mrb[8].mxu1 %v663_v21  ;;  %v916_v21 = vld [vmem:[%s1826_s8 + $0x8] sm:$0xff] }
 0x424   :  { %1186 = vmatmul.mubr.msk.f32.vlgmr.msra.gmra.mrb[8].mxu0 %vm249_vm0, %v662_v27  ;;  %784 = vmatprep.mubr.f32.mxu1 %v667_v22  ;;  %v915_v27 = vld [vmem:[%s1826_s8] sm:$0xff] }
 0x425   :  { %1188 = vmatprep.mubr.msk.f32.mxu0 %vm249_vm0, %v665_v23 }
 0x427   :  { %785 = vmatmul.mubr.f32.gmra.mrb[10].mxu1 %v666_v26 }
 0x428   :  { %1189 = vmatmul.mubr.msk.f32.gmra.mrb[10].mxu0 %vm249_vm0, %v668_v29 }
 0x42b   :  { %v681_v37 = vpop.permute.xlu0 %680 }
 0x42c   :  { %v676_v33 = vpop.permute.xlu1 %675 }
 0x42f   :  { %v691_v28 = vpop.permute.xlu0 %690 }
 0x430   :  { %v686_v42 = vpop.permute.xlu1 %685 }
 0x4ee   :  { %v1143_v30 = vpop.f32.mrb[4].mxu1 }
 0x4ef   :  { %v1144_v31 = vpop.f32.mrb[5].mxu1 }
 0x4f0   :  { %v1145_v24 = vadd.f32 %v1144_v31, %v1143_v30  ;;  %v917_v30 = vld [vmem:[%s1826_s8 + $0x10] sm:$0xff] }
 0x4f2   :  { %v1146_v25 = vpop.f32.mrb[6].mxu1  ;;  %v772_v40 = vadd.f32 %v1145_v24, %v676_v33 }
 0x4f3   :  { %v1147_v34 = vpop.f32.mrb[7].mxu1 }
 0x4f4   :  { %v1148_v35 = vadd.f32 %v1147_v34, %v1146_v25  ;;  %v918_v25 = vld [vmem:[%s1826_s8 + $0x18] sm:$0xff]  ;;  %s1380_s8 = smov [#allocation5]  }
 0x4f6   :  { %v1149_v38 = vpop.f32.mrb[8].mxu1  ;;  %v777_v14 = vadd.f32 %v1148_v35, %v681_v37  ;;  %v949_v35 = vld [vmem:[%s1827_s9 + $0x10] sm:$0xff]  ;;  %v950_v37 = vld [vmem:[%s1827_s9 + $0x18] sm:$0xff]  ;;  %s1016_s9 = sshll.u32 %s1380_s8, 4  ;;  %s1017_s9 = int_to_ptr.vmem [resolvable:$true] %s1016_s9 }
 0x4f7   :  { %v1150_v32 = vpop.f32.mrb[9].mxu1  ;;  %v1187_v39 = vpop.f32.mrb[8].mxu0  ;;  %s1343_s1 = scalar_lea.vmem %s1017_s9, 512  ;;  %p1348_p9 = scmp.lt.s32.totalorder %s1017_s9, %s1017_s9 }
 0x4f8   :  { %v1151_v41 = vadd.f32 %v1150_v32, %v1149_v38  ;;  %v862_v19 = vadd.f32 %v1187_v39, %v777_v14  ;;  %v856_v36 = vpop.f32.mrb[9].mxu0  ;;  %p1344_p8 = scmp.ne.s32.totalorder %s1017_s9, %s1343_s1  ;;  %p1349_p10 = scmp.lt.s32.totalorder %s1343_s1, %s1343_s1 }
 0x4f9   :  { %v857_v43 = vadd.f32 %v856_v36, %v772_v40 }
 0x4fa   :  { %v1152_v44 = vpop.f32.mrb[10].mxu1  ;;  %877 = vadd.xlane.f32.xlu0 %v862_v19  ;;  %v782_v46 = vadd.f32 %v1151_v41, %v686_v42  ;;  %v1317_v42 = vld [vmem:[#allocation2 + $0x8] sm:$0xff]  ;;  %p1350_p11 = por %p1349_p10, %p1348_p9 }
 0x4fb   :  { %v1153_v47 = vpop.f32.mrb[11].mxu1  ;;  %v1190_v48 = vpop.f32.mrb[10].mxu0  ;;  %875 = vadd.xlane.f32.xlu1 %v857_v43 }
 0x4fc   :  { %v1154_v49 = vadd.f32 %v1153_v47, %v1152_v44  ;;  %v866_v50 = vpop.f32.mrb[11].mxu0  ;;  %p1351_p12 = pnand %p1350_p11, %p1344_p8 }
 0x4fd   :  { %v867_v52 = vadd.f32 %v866_v50, %v782_v46  ;;  %v1318_v46 = vld [vmem:[#allocation2] sm:$0xff] }
 0x4fe   :  { %v787_v53 = vadd.f32 %v1154_v49, %v691_v28 }
 0x4ff   :  { %879 = vadd.xlane.f32.xlu0 %v867_v52 }
 0x500   :  { %v872_v54 = vadd.f32 %v1190_v48, %v787_v53 }
 0x502   :  { %881 = vadd.xlane.f32.xlu1 %v872_v54 }
 0x587   :  { %v878_v55 = vpop.xlane.xlu0 %877 }
 0x588   :  { %v884_v56 = vmul.f32 0.0078125, %v878_v55  ;;  %v876_v45 = vpop.xlane.xlu1 %875  ;;  %v1319_v55 = vld [vmem:[#allocation2 + $0x10] sm:$0xff] }
 0x589   :  { %v883_v57 = vmul.f32 0.0078125, %v876_v45 }
 0x58a   :  { %v888_v58 = vsub.f32 %v862_v19, %v884_v56 }
 0x58b   :  { %v887_v59 = vsub.f32 %v857_v43, %v883_v57 }
 0x58c   :  { %v880_v60 = vpop.xlane.xlu0 %879  ;;  %v892_v61 = vmul.f32 %v888_v58, %v888_v58 }
 0x58d   :  { %v885_v62 = vmul.f32 0.0078125, %v880_v60  ;;  %v891_v63 = vmul.f32 %v887_v59, %v887_v59 }
 0x58e   :  { %897 = vadd.xlane.f32.xlu1 %v892_v61 }
 0x58f   :  { %v1769_v0 = vsub.f32 %v867_v52, %v885_v62  ;;  %895 = vadd.xlane.f32.xlu0 %v891_v63  ;;  %v882_v1 = vpop.xlane.xlu1 %881 }
 0x590   :  { %v886_v51 = vmul.f32 0.0078125, %v882_v1 }
 0x591   :  { %v893_v2 = vmul.f32 %v1769_v0, %v1769_v0 }
 0x592   :  { %v1773_v4 = vsub.f32 %v872_v54, %v886_v51 }
 0x593   :  { %899 = vadd.xlane.f32.xlu0 %v893_v2 }
 0x594   :  { %v894_v5 = vmul.f32 %v1773_v4, %v1773_v4 }
 0x596   :  { %901 = vadd.xlane.f32.xlu1 %v894_v5 }
 0x5a7   :  { %953 = vperm.xlu1 %1284, %v947_v6  }
 0x5a9   :  { %958 = vperm.xlu0 %1283, %v948_v7  }
 0x61b   :  { %v898_v8 = vpop.xlane.xlu1 %897 }
 0x61c   :  { %v904_v10 = vmul.f32 0.0078125, %v898_v8  ;;  %v896_v3 = vpop.xlane.xlu0 %895 }
 0x61d   :  { %v903_v11 = vmul.f32 0.0078125, %v896_v3 }
 0x61e   :  { %v908_v12 = vadd.f32 1e-05, %v904_v10 }
 0x61f   :  { %v907_v9 = vadd.f32 1e-05, %v903_v11 }
 0x620   :  { %1301 = vrsqrt.f32 %v908_v12  ;;  %v900_v13 = vpop.xlane.xlu0 %899 }
 0x621   :  { %1303 = vrsqrt.f32 %v907_v9  ;;  %v905_v15 = vmul.f32 0.0078125, %v900_v13 }
 0x623   :  { %v909_v16 = vadd.f32 1e-05, %v905_v15  ;;  %v902_v17 = vpop.xlane.xlu1 %901 }
 0x624   :  { %v906_v18 = vmul.f32 0.0078125, %v902_v17 }
 0x625   :  { %1305 = vrsqrt.f32 %v909_v16 }
 0x626   :  { %v910_v20 = vadd.f32 1e-05, %v906_v18 }
 0x627   :  { %v954_v38 = vpop.permute.xlu1 %953 }
 0x628   :  { %1307 = vrsqrt.f32 %v910_v20  ;;  %v959_v14 = vpop.permute.xlu0 %958 }
 0x62a   :  { %v1302_v22 = vpop.eup %1301 }
 0x62b   :  { %v1304_v23 = vpop.eup %1303  ;;  %v920_v26 = vmul.f32 %v1302_v22, %v916_v21 }
 0x62c   :  { %v919_v29 = vmul.f32 %v1304_v23, %v915_v27 }
 0x62d   :  { %930 = vperm.xlu1 %1284, %v920_v26  }
 0x62e   :  { %925 = vperm.xlu0 %1283, %v919_v29  }
 0x62f   :  { %v1306_v31 = vpop.eup %1305 }
 0x630   :  { %v921_v24 = vmul.f32 %v1306_v31, %v917_v30 }
 0x632   :  { %v1308_v33 = vpop.eup %1307  ;;  %935 = vperm.xlu1 %1284, %v921_v24  }
 0x633   :  { %v922_v34 = vmul.f32 %v1308_v33, %v918_v25 }
 0x635   :  { %940 = vperm.xlu0 %1283, %v922_v34  }
 0x636   :  { %963 = vperm.xlu1 %1284, %v949_v35  }
 0x639   :  { %968 = vperm.xlu0 %1283, %v950_v37  }
 0x6ac   :  { %v931_v32 = vpop.permute.xlu1 %930 }
 0x6ad   :  { %v944_v39 = vmul.f32 %v931_v32, %v888_v58  ;;  %v926_v40 = vpop.permute.xlu0 %925 }
 0x6ae   :  { %v943_v41 = vmul.f32 %v926_v40, %v887_v59  ;;  %v1320_v59 = vld [vmem:[#allocation2 + $0x18] sm:$0xff] }
 0x6af   :  { %v972_v19 = vadd.f32 %v959_v14, %v944_v39 }
 0x6b0   :  { %v971_v36 = vadd.f32 %v954_v38, %v943_v41 }
 0x6b1   :  { %v976_v43 = vadd.f32 %v1317_v42, %v972_v19  ;;  %v936_v44 = vpop.permute.xlu1 %935 }
 0x6b2   :  { %v975_v47 = vadd.f32 %v1318_v46, %v971_v36  ;;  %v945_v50 = vmul.f32 %v936_v44, %v1769_v0 }
 0x6b3   :  { %v985_v48 = vmul.f32 1.442695, %v976_v43  ;;  %vm980_vm5 = vcmp.gt.f32.partialorder %v976_v43, 0.0 }
 0x6b4   :  { %v983_v49 = vmul.f32 1.442695, %v975_v47  ;;  %v941_v28 = vpop.permute.xlu0 %940  ;;  %vm979_vm6 = vcmp.gt.f32.partialorder %v975_v47, 0.0 }
 0x6b5   :  { %1309 = vpow2.f32 %v985_v48  ;;  %v964_v52 = vpop.permute.xlu1 %963  ;;  %v946_v54 = vmul.f32 %v941_v28, %v1773_v4 }
 0x6b6   :  { %1311 = vpow2.f32 %v983_v49  ;;  %v973_v53 = vadd.f32 %v964_v52, %v945_v50 }
 0x6b8   :  { %v977_v56 = vadd.f32 %v1319_v55, %v973_v53  ;;  %v969_v45 = vpop.permute.xlu0 %968 }
 0x6b9   :  { %v974_v57 = vadd.f32 %v969_v45, %v946_v54 }
 0x6ba   :  { %v987_v58 = vmul.f32 1.442695, %v977_v56  ;;  %vm981_vm7 = vcmp.gt.f32.partialorder %v977_v56, 0.0 }
 0x6bb   :  { %v978_v60 = vadd.f32 %v1320_v59, %v974_v57 }
 0x6bc   :  { %1313 = vpow2.f32 %v987_v58 }
 0x6bd   :  { %v989_v61 = vmul.f32 1.442695, %v978_v60  ;;  %vm982_vm8 = vcmp.gt.f32.partialorder %v978_v60, 0.0 }
 0x6bf   :  { %v1310_v62 = vpop.eup %1309  ;;  %1315 = vpow2.f32 %v989_v61 }
 0x6c0   :  { %v1312_v63 = vpop.eup %1311  ;;  %v1056_v0 = vadd.f32 -1.0, %v1310_v62 }
 0x6c1   :  { %v1055_v1 = vadd.f32 -1.0, %v1312_v63 }
 0x6c2   :  { %v996_v51 = vmul.f32 1.6732632, %v1056_v0 }
 0x6c3   :  { %v995_v2 = vmul.f32 1.6732632, %v1055_v1 }
 0x6c4   :  { %v1000_v5 = vsel %vm980_vm5, %v976_v43, %v996_v51 }
 0x6c5   :  { %v1004_v4 = vmul.f32 1.050701, %v1000_v5  ;;  %v999_v6 = vsel %vm979_vm6, %v975_v47, %v995_v2 }
 0x6c6   :  { %v1314_v7 = vpop.eup %1313  ;;  %v1003_v8 = vmul.f32 1.050701, %v999_v6 }
 0x6c7   :  { %1008 = vst [vmem:[#allocation5 + $0x8] sm:$0xff] %v1004_v4  ;;  %v1057_v10 = vadd.f32 -1.0, %v1314_v7 }
 0x6c8   :  { %1007 = vst [vmem:[#allocation5] sm:$0xff] %v1003_v8 }
 0x6c9   :  { %v1316_v3 = vpop.eup %1315  ;;  %v997_v11 = vmul.f32 1.6732632, %v1057_v10 }
 0x6ca   :  { %v1058_v12 = vadd.f32 -1.0, %v1316_v3 }
 0x6cb   :  { %v1001_v9 = vsel %vm981_vm7, %v977_v56, %v997_v11 }
 0x6cc   :  { %v1005_v13 = vmul.f32 1.050701, %v1001_v9  ;;  %v998_v15 = vmul.f32 1.6732632, %v1058_v12 }
 0x6ce   :  { %1009 = vst [vmem:[#allocation5 + $0x10] sm:$0xff] %v1005_v13  ;;  %v1002_v16 = vsel %vm982_vm8, %v978_v60, %v998_v15 }
 0x6cf   :  { %v1006_v17 = vmul.f32 1.050701, %v1002_v16 }
 0x6d1   :  { %1010 = vst [vmem:[#allocation5 + $0x18] sm:$0xff] %v1006_v17 }
 0x6d2   :  { %1354 = shalt.err (!%p1351_p12)
}
 0x6d3   :  { %s1355_s4 = scalar_lea.hbm %s1828_s10, 512 }
 0x6d4   :  { %p1356_p13 = scmp.ne.s32.totalorder %s1828_s10, %s1355_s4  ;;  %p1359_p0 = scmp.lt.u32.totalorder %s1355_s4, %s1828_s10 }
 0x6d6   :  { %p1361_p1 = pnand %p1359_p0, %p1356_p13 }
 0x6d8   :  { %1364 = shalt.err (!%p1361_p1)
}
 0x6d9   :  { %1022 = dma.vmem_to_hbm [thread:$0]  %s1017_s9, 512, %s1828_s10, [#allocation4], %s1370_s23, %s1370_s23, %s1371_s24  }
 0x6da   :  { %1367 = dma.done.wait [#allocation4], 512  }
 0x6db   :  { %1368 = vsyncadd [#allocation4], 4294966784 }
 0x6dc   :  { %1026 = vsyncpa [#allocation3], 1 }
 0x6dd   :  { %1027 = vsyncpa [#allocation4], 1 }

</bundles_post_ra>
